<compile_context>
chip_gen: v6e
topology: v6e:2x2x1
jax: 0.10.0
libtpu: 0.0.40
codegen_flags: <defaults>
</compile_context>

<pallas_src>
import functools

import jax
import jax.numpy as jnp
from jax.experimental import pallas as pl
from jax.experimental.pallas import tpu as pltpu

_HIGHEST = jax.lax.Precision.HIGHEST


def _attention_kernel(v_ref, wv_ref, bv_ref, c_ref, out_ref, *, k_real, hid_chunk):
    # v_ref : (B_TILE, k_pad, v_dim)   (f32 or bf16)
    # wv_ref: (v_dim, num_hid)         (same dtype as v_ref)
    # bv_ref: (1, num_hid)             f32
    # c_ref : (B_TILE, num_hid)        f32  == ReLU(q@Wq + bq) * wl[:, 0]
    # out   : (B_TILE, k_pad)          f32  softmax over the first k_real cols
    b_tile, k_pad, v_dim = v_ref.shape
    num_hid = wv_ref.shape[1]

    # k_pad % 8 == 0  => this reshape is a pure sublane leading-dim fold
    # (no relayout copy), and feeds the MXU b_tile*k_pad rows at once.
    v2 = v_ref[...].reshape(b_tile * k_pad, v_dim)

    logits = jnp.zeros((b_tile, k_pad), jnp.float32)
    # Chunk the hidden dim so the live f32 intermediate stays small instead of
    # materializing the full (b_tile*k_pad, num_hid) v_proj.  Chunk boundaries
    # are static (trace-time loop; chunk count is tiny at production shapes).
    for h0 in range(0, num_hid, hid_chunk):
        h1 = min(h0 + hid_chunk, num_hid)
        hc = h1 - h0
        vp = jnp.dot(v2, wv_ref[:, h0:h1], preferred_element_type=jnp.float32)
        vp = jnp.maximum(vp + bv_ref[:, h0:h1], 0.0)       # (b_tile*k_pad, hc) f32
        # logits[b, j] += sum_h vp[b, j, h] * c[b, h]  (VPU mul + XLU reduce)
        logits = logits + jnp.sum(
            vp.reshape(b_tile, k_pad, hc) * c_ref[:, h0:h1][:, None, :], axis=-1)

    # Mask padded k columns (static condition; no-op when k was already aligned).
    if k_real != k_pad:
        col = jax.lax.broadcasted_iota(jnp.int32, (b_tile, k_pad), 1)
        logits = jnp.where(col < k_real, logits, -jnp.inf)

    # Softmax over k.  bl omitted: a uniform shift along the softmax axis.
    m = jnp.max(logits, axis=-1, keepdims=True)
    e = jnp.exp(logits - m)
    s = jnp.sum(e, axis=-1, keepdims=True)
    inv = pl.reciprocal(s, approx=True)      # EUP slot (otherwise idle here)
    inv = inv * (2.0 - s * inv)              # one Newton step -> ~f32 accuracy
    out_ref[...] = (e * inv).astype(out_ref.dtype)


def new_attention(v, q, params, *, block_batch=32, compute_dtype=jnp.bfloat16,
                  hid_chunk=512, vmem_limit_bytes=None):
    """v: [batch, k, v_dim], q: [batch, q_dim] -> softmax weights [batch, k, 1]."""
    batch, k, v_dim = v.shape
    wv, bv, wq, bq, wl, bl = params
    num_hid = wv.shape[1]
    del bl  # uniform shift along the softmax axis -> no effect on the output

    # Fold the whole q path + final linear into one per-batch vector (XLA side):
    #   c_b = ReLU(q_b @ Wq + bq) * wl[:, 0]      shape (batch, num_hid), f32
    c = (jnp.maximum(
            jnp.dot(q.astype(jnp.float32), wq, precision=_HIGHEST) + bq, 0.0)
         * wl[:, 0][None, :]).astype(jnp.float32)

    # bf16 MXU operands by default (f32 accumulate in-kernel): ~2-4x on the
    # dominant matmul and halves the v DMA / resident Wv footprint.
    v_in = v.astype(compute_dtype)
    wv_in = wv.astype(compute_dtype)

    # Pad k to a sublane multiple so in-kernel reshapes are pure folds.
    k_pad = ((k + 7) // 8) * 8
    if k_pad != k:
        v_in = jnp.pad(v_in, ((0, 0), (0, k_pad - k), (0, 0)))

    # Batch tile.  Choose block_batch so block_batch*k_pad is a multiple of the
    # MXU edge (256 on v6e/v7x, 128 on v5e); default 32 with k~36->40 gives
    # M = 1280 = 5*256.  Keep >= 2 grid steps when batch allows (v7x megacore)
    # without breaking 8-sublane alignment of the batch-tile dim.
    b_tile = min(block_batch, batch)
    if batch // b_tile < 2 and batch >= 16 and (batch // 2) % 8 == 0:
        b_tile = batch // 2
    padded = pl.cdiv(batch, b_tile) * b_tile
    if padded != batch:
        v_in = jnp.pad(v_in, ((0, padded - batch), (0, 0), (0, 0)))
        c = jnp.pad(c, ((0, padded - batch), (0, 0)))
    grid = (padded // b_tile,)

    hid_chunk = max(1, min(hid_chunk, num_hid))

    # Explicit VMEM budget (v7x: 64 MiB physical / 32 MiB default scoped;
    # v5e default ~16 MiB).  v and c are double-buffered by the pipeline;
    # Wv / bv are single-buffered below.
    if vmem_limit_bytes is None:
        itm = jnp.dtype(compute_dtype).itemsize
        est = (2 * b_tile * k_pad * v_dim * itm            # v (double buffer)
               + v_dim * num_hid * itm + num_hid * 4       # Wv + bv (single)
               + 2 * b_tile * num_hid * 4                  # c (double buffer)
               + 2 * b_tile * k_pad * 4                    # out (double buffer)
               + 2 * b_tile * k_pad * hid_chunk * 4)       # live intermediates
        vmem_limit_bytes = min(max(2 * est, 32 * 1024 * 1024), 96 * 1024 * 1024)

    kernel = functools.partial(_attention_kernel, k_real=k, hid_chunk=hid_chunk)

    def build(weight_pipeline_mode):
        extra = ({} if weight_pipeline_mode is None
                 else {"pipeline_mode": weight_pipeline_mode})
        return pl.pallas_call(
            kernel,
            out_shape=jax.ShapeDtypeStruct((padded, k_pad), jnp.float32),
            grid_spec=pltpu.PrefetchScalarGridSpec(
                num_scalar_prefetch=0,
                grid=grid,
                in_specs=[
                    pl.BlockSpec((b_tile, k_pad, v_dim), lambda b: (b, 0, 0)),  # v slab
                    pl.BlockSpec((v_dim, num_hid), lambda b: (0, 0), **extra),  # Wv^T
                    pl.BlockSpec((1, num_hid), lambda b: (0, 0), **extra),      # bv
                    pl.BlockSpec((b_tile, num_hid), lambda b: (b, 0)),          # folded q
                ],
                out_specs=pl.BlockSpec((b_tile, k_pad), lambda b: (b, 0)),
            ),
            compiler_params=pltpu.CompilerParams(
                dimension_semantics=("parallel",),        # batch tiles independent
                vmem_limit_bytes=int(vmem_limit_bytes)),
        )

    try:
        # Constant-index Wv / bv: single pipeline buffer (saves 4-8 MiB VMEM).
        out = build(pl.Buffered(1))(v_in, wv_in, bv, c)
    except Exception:
        # Fallback if this jax build rejects buffer_count=1 pipeline_mode.
        out = build(None)(v_in, wv_in, bv, c)

    return out[:batch, :k].reshape(batch, k, 1)


def _weight_norm_effective(v_raw, g):
    """weight_norm with dim=None: W = g * V / ||V||_F (g scalar)."""
    return g * v_raw / jnp.sqrt(jnp.sum(v_raw * v_raw))


def init_params(key, v_dim, q_dim, num_hid):
    """PyTorch-Linear-style uniform init; weights pre-transposed to [in, out],
    biases as [1, out]; weight_norm folded into effective weights."""
    ks = jax.random.split(key, 6)

    def lin(kw, kb, fan_in, fan_out):
        bound = 1.0 / jnp.sqrt(fan_in)
        w = jax.random.uniform(kw, (fan_out, fan_in), jnp.float32, -bound, bound)
        b = jax.random.uniform(kb, (fan_out,), jnp.float32, -bound, bound)
        return w, b

    wv_raw, bv = lin(ks[0], ks[1], v_dim, num_hid)
    wv = _weight_norm_effective(wv_raw, jnp.sqrt(jnp.sum(wv_raw * wv_raw)))

    wq_raw, bq = lin(ks[2], ks[3], q_dim, num_hid)
    wq = _weight_norm_effective(wq_raw, jnp.sqrt(jnp.sum(wq_raw * wq_raw)))

    wl_raw, bl = lin(ks[4], ks[5], q_dim, 1)   # requires num_hid == q_dim
    wl = _weight_norm_effective(wl_raw, jnp.sqrt(jnp.sum(wl_raw * wl_raw)))

    return (wv.T, bv[None, :], wq.T, bq[None, :], wl.T, bl[None, :])


def reference(v, q, params):
    """Plain-JAX reference of the PyTorch forward (eval mode, with bl).
    Dropout is identity in eval mode, so it is omitted."""
    wv, bv, wq, bq, wl, bl = params
    v_proj = jnp.maximum(
        jnp.einsum('bkd,dh->bkh', v, wv, precision=_HIGHEST) + bv[None], 0.0)
    q_proj = jnp.maximum(jnp.dot(q, wq, precision=_HIGHEST) + bq, 0.0)[:, None, :]
    joint = v_proj * q_proj
    logits = jnp.einsum('bkh,ho->bko', joint, wl, precision=_HIGHEST) + bl[None]
    return jax.nn.softmax(logits, axis=1)


if __name__ == "__main__":
    batch, k, v_dim = 2, 8, 16
    q_dim = num_hid = 32   # module requires num_hid == q_dim (see note above)

    key = jax.random.PRNGKey(0)
    k_v, k_q, k_p = jax.random.split(key, 3)
    v = jax.random.normal(k_v, (batch, k, v_dim), jnp.float32)
    q = jax.random.normal(k_q, (batch, q_dim), jnp.float32)
    params = init_params(k_p, v_dim, q_dim, num_hid)

    ref = reference(v, q, params)

    # f32 MXU-operand path: tight check.
    out_f32 = jax.block_until_ready(
        new_attention(v, q, params, compute_dtype=jnp.float32))
    assert out_f32.shape == (batch, k, 1), out_f32.shape
    assert jnp.allclose(out_f32, ref, atol=2e-3, rtol=2e-3), \
        float(jnp.max(jnp.abs(out_f32 - ref)))
    assert jnp.allclose(jnp.sum(out_f32, axis=1), 1.0, atol=1e-3)

    # Default bf16 MXU-operand path: loose check.
    out_bf16 = jax.block_until_ready(new_attention(v, q, params))
    assert out_bf16.shape == (batch, k, 1), out_bf16.shape
    assert jnp.allclose(out_bf16, ref, atol=2e-2), \
        float(jnp.max(jnp.abs(out_bf16 - ref)))
    assert jnp.allclose(jnp.sum(out_bf16, axis=1), 1.0, atol=1e-3)

    # k not a multiple of 8: exercises the sublane padding + -inf mask path.
    k2 = 6
    v2 = v[:, :k2, :]
    ref2 = reference(v2, q, params)
    out2 = jax.block_until_ready(
        new_attention(v2, q, params, compute_dtype=jnp.float32))
    assert out2.shape == (batch, k2, 1), out2.shape
    assert jnp.allclose(out2, ref2, atol=2e-3, rtol=2e-3), \
        float(jnp.max(jnp.abs(out2 - ref2)))
    assert jnp.allclose(jnp.sum(out2, axis=1), 1.0, atol=1e-3)

    print("KERNEL_OK")
</pallas_src>

<mosaic_0001>
module attributes {stable_mosaic.version = 11 : i64} {
  func.func @_attention_kernel(%arg0: i32, %arg1: memref<2x8x16xf32, #tpu.memory_space<vmem>>, %arg2: memref<16x32xf32, #tpu.memory_space<vmem>>, %arg3: memref<1x32xf32, #tpu.memory_space<vmem>>, %arg4: memref<2x32xf32, #tpu.memory_space<vmem>>, %arg5: memref<2x8xf32, #tpu.memory_space<vmem>>) attributes {dimension_semantics = [#tpu.dimension_semantics<parallel>], iteration_bounds = array<i64: 1>, scalar_prefetch = 0 : i64, scratch_operands = 0 : i64, tpu.core_type = #tpu.core_type<tc>, window_params = [{transform_indices = @transform_0, window_bounds = array<i64: 2, 8, 16>}, {pipeline_mode = #tpu.pipeline_mode<synchronous>, transform_indices = @transform_1, window_bounds = array<i64: 16, 32>}, {pipeline_mode = #tpu.pipeline_mode<synchronous>, transform_indices = @transform_2, window_bounds = array<i64: 1, 32>}, {transform_indices = @transform_3, window_bounds = array<i64: 2, 32>}, {transform_indices = @transform_4, window_bounds = array<i64: 2, 8>}]} {
    %c0 = arith.constant 0 : index
    %c0_0 = arith.constant 0 : index
    %c0_1 = arith.constant 0 : index
    %0 = vector.load %arg1[%c0, %c0_0, %c0_1] : memref<2x8x16xf32, #tpu.memory_space<vmem>>, vector<2x8x16xf32>
    %1 = vector.shape_cast %0 : vector<2x8x16xf32> to vector<16x16xf32>
    %cst = arith.constant 0.000000e+00 : f32
    %2 = vector.broadcast %cst : f32 to vector<2x8xf32>
    %c0_2 = arith.constant 0 : index
    %c0_3 = arith.constant 0 : index
    %3 = vector.load %arg2[%c0_2, %c0_3] : memref<16x32xf32, #tpu.memory_space<vmem>>, vector<16x32xf32>
    %cst_4 = arith.constant dense<0.000000e+00> : vector<16x32xf32>
    %4 = tpu.matmul %1, %3, %cst_4 {dimension_numbers = #tpu.dot_dimension_numbers<[1], [0], [0], [1], [0, 0, 1, 1], [], []>} : vector<16x16xf32>, vector<16x32xf32>, vector<16x32xf32> -> vector<16x32xf32>
    %c0_5 = arith.constant 0 : index
    %c0_6 = arith.constant 0 : index
    %5 = vector.load %arg3[%c0_5, %c0_6] : memref<1x32xf32, #tpu.memory_space<vmem>>, vector<1x32xf32>
    %6 = vector.broadcast %5 : vector<1x32xf32> to vector<16x32xf32>
    %7 = arith.addf %4, %6 : vector<16x32xf32>
    %cst_7 = arith.constant 0.000000e+00 : f32
    %8 = vector.broadcast %cst_7 : f32 to vector<16x32xf32>
    %9 = arith.maximumf %7, %8 : vector<16x32xf32>
    %10 = vector.shape_cast %9 : vector<16x32xf32> to vector<2x8x32xf32>
    %c0_8 = arith.constant 0 : index
    %c0_9 = arith.constant 0 : index
    %11 = vector.load %arg4[%c0_8, %c0_9] : memref<2x32xf32, #tpu.memory_space<vmem>>, vector<2x32xf32>
    %12 = vector.shape_cast %11 : vector<2x32xf32> to vector<2x1x32xf32>
    %13 = vector.broadcast %12 : vector<2x1x32xf32> to vector<2x8x32xf32>
    %14 = arith.mulf %10, %13 : vector<2x8x32xf32>
    %cst_10 = arith.constant dense<0.000000e+00> : vector<2x8xf32>
    %15 = vector.multi_reduction <add>, %14, %cst_10 [2] : vector<2x8x32xf32> to vector<2x8xf32>
    %16 = arith.addf %2, %15 : vector<2x8xf32>
    %cst_11 = arith.constant dense<0xFF800000> : vector<2xf32>
    %17 = vector.multi_reduction <maximumf>, %16, %cst_11 [1] : vector<2x8xf32> to vector<2xf32>
    %18 = vector.shape_cast %17 : vector<2xf32> to vector<2x1xf32>
    %19 = vector.broadcast %18 : vector<2x1xf32> to vector<2x8xf32>
    %20 = arith.subf %16, %19 : vector<2x8xf32>
    %21 = math.exp %20 : vector<2x8xf32>
    %cst_12 = arith.constant dense<0.000000e+00> : vector<2xf32>
    %22 = vector.multi_reduction <add>, %21, %cst_12 [1] : vector<2x8xf32> to vector<2xf32>
    %23 = vector.shape_cast %22 : vector<2xf32> to vector<2x1xf32>
    %24 = tpu.reciprocal %23 {approx = true} : vector<2x1xf32> -> vector<2x1xf32>
    %25 = arith.mulf %23, %24 : vector<2x1xf32>
    %cst_13 = arith.constant 2.000000e+00 : f32
    %26 = vector.broadcast %cst_13 : f32 to vector<2x1xf32>
    %27 = arith.subf %26, %25 : vector<2x1xf32>
    %28 = arith.mulf %24, %27 : vector<2x1xf32>
    %29 = vector.broadcast %28 : vector<2x1xf32> to vector<2x8xf32>
    %30 = arith.mulf %21, %29 : vector<2x8xf32>
    %c0_14 = arith.constant 0 : index
    %c0_15 = arith.constant 0 : index
    %31 = vector.load %arg5[%c0_14, %c0_15] : memref<2x8xf32, #tpu.memory_space<vmem>>, vector<2x8xf32>
    tpu.vector_store %arg5[%c0_14, %c0_15], %30 {strides = array<i32>} : memref<2x8xf32, #tpu.memory_space<vmem>>, vector<2x8xf32>,
    return
  }
  func.func @transform_0(%arg0: i32) -> (i32, i32, i32) {
    %c0_i32 = arith.constant 0 : i32
    %c0_i32_0 = arith.constant 0 : i32
    %c0_i32_1 = arith.constant 0 : i32
    return %arg0, %c0_i32, %c0_i32_0 : i32, i32, i32
  }
  func.func @transform_1(%arg0: i32) -> (i32, i32) {
    %c0_i32 = arith.constant 0 : i32
    %c0_i32_0 = arith.constant 0 : i32
    %c0_i32_1 = arith.constant 0 : i32
    return %c0_i32, %c0_i32_0 : i32, i32
  }
  func.func @transform_2(%arg0: i32) -> (i32, i32) {
    %c0_i32 = arith.constant 0 : i32
    %c0_i32_0 = arith.constant 0 : i32
    %c0_i32_1 = arith.constant 0 : i32
    return %c0_i32, %c0_i32_0 : i32, i32
  }
  func.func @transform_3(%arg0: i32) -> (i32, i32) {
    %c0_i32 = arith.constant 0 : i32
    %c0_i32_0 = arith.constant 0 : i32
    return %arg0, %c0_i32 : i32, i32
  }
  func.func @transform_4(%arg0: i32) -> (i32, i32) {
    %c0_i32 = arith.constant 0 : i32
    %c0_i32_0 = arith.constant 0 : i32
    return %arg0, %c0_i32 : i32, i32
  }
}

module attributes {stable_mosaic.version = 11 : i64} {
  func.func @_attention_kernel(%arg0: i32, %arg1: memref<2x8x16xf32, #tpu.memory_space<vmem>>, %arg2: memref<16x32xf32, #tpu.memory_space<vmem>>, %arg3: memref<1x32xf32, #tpu.memory_space<vmem>>, %arg4: memref<2x32xf32, #tpu.memory_space<vmem>>, %arg5: memref<2x8xf32, #tpu.memory_space<vmem>>) attributes {dimension_semantics = [#tpu.dimension_semantics<parallel>], iteration_bounds = array<i64: 1>, scalar_prefetch = 0 : i64, scratch_operands = 0 : i64, tpu.core_type = #tpu.core_type<tc>, window_params = [{transform_indices = @transform_0, window_bounds = array<i64: 2, 8, 16>}, {pipeline_mode = #tpu.pipeline_mode<synchronous>, transform_indices = @transform_1, window_bounds = array<i64: 16, 32>}, {pipeline_mode = #tpu.pipeline_mode<synchronous>, transform_indices = @transform_2, window_bounds = array<i64: 1, 32>}, {transform_indices = @transform_3, window_bounds = array<i64: 2, 32>}, {transform_indices = @transform_4, window_bounds = array<i64: 2, 8>}]} {
    %c0 = arith.constant 0 : index
    %c0_0 = arith.constant 0 : index
    %c0_1 = arith.constant 0 : index
    %0 = vector.load %arg1[%c0, %c0_0, %c0_1] : memref<2x8x16xf32, #tpu.memory_space<vmem>>, vector<2x8x16xf32>
    %1 = vector.shape_cast %0 : vector<2x8x16xf32> to vector<16x16xf32>
    %cst = arith.constant 0.000000e+00 : f32
    %2 = vector.broadcast %cst : f32 to vector<2x8xf32>
    %c0_2 = arith.constant 0 : index
    %c0_3 = arith.constant 0 : index
    %3 = vector.load %arg2[%c0_2, %c0_3] : memref<16x32xf32, #tpu.memory_space<vmem>>, vector<16x32xf32>
    %cst_4 = arith.constant dense<0.000000e+00> : vector<16x32xf32>
    %4 = tpu.matmul %1, %3, %cst_4 {dimension_numbers = #tpu.dot_dimension_numbers<[1], [0], [0], [1], [0, 0, 1, 1], [], []>} : vector<16x16xf32>, vector<16x32xf32>, vector<16x32xf32> -> vector<16x32xf32>
    %c0_5 = arith.constant 0 : index
    %c0_6 = arith.constant 0 : index
    %5 = vector.load %arg3[%c0_5, %c0_6] : memref<1x32xf32, #tpu.memory_space<vmem>>, vector<1x32xf32>
    %6 = vector.broadcast %5 : vector<1x32xf32> to vector<16x32xf32>
    %7 = arith.addf %4, %6 : vector<16x32xf32>
    %cst_7 = arith.constant 0.000000e+00 : f32
    %8 = vector.broadcast %cst_7 : f32 to vector<16x32xf32>
    %9 = arith.maximumf %7, %8 : vector<16x32xf32>
    %10 = vector.shape_cast %9 : vector<16x32xf32> to vector<2x8x32xf32>
    %c0_8 = arith.constant 0 : index
    %c0_9 = arith.constant 0 : index
    %11 = vector.load %arg4[%c0_8, %c0_9] : memref<2x32xf32, #tpu.memory_space<vmem>>, vector<2x32xf32>
    %12 = vector.shape_cast %11 : vector<2x32xf32> to vector<2x1x32xf32>
    %13 = vector.broadcast %12 : vector<2x1x32xf32> to vector<2x8x32xf32>
    %14 = arith.mulf %10, %13 : vector<2x8x32xf32>
    %cst_10 = arith.constant dense<0.000000e+00> : vector<2x8xf32>
    %15 = vector.multi_reduction <add>, %14, %cst_10 [2] : vector<2x8x32xf32> to vector<2x8xf32>
    %16 = arith.addf %2, %15 : vector<2x8xf32>
    %cst_11 = arith.constant dense<0xFF800000> : vector<2xf32>
    %17 = vector.multi_reduction <maximumf>, %16, %cst_11 [1] : vector<2x8xf32> to vector<2xf32>
    %18 = vector.shape_cast %17 : vector<2xf32> to vector<2x1xf32>
    %19 = vector.broadcast %18 : vector<2x1xf32> to vector<2x8xf32>
    %20 = arith.subf %16, %19 : vector<2x8xf32>
    %21 = math.exp %20 : vector<2x8xf32>
    %cst_12 = arith.constant dense<0.000000e+00> : vector<2xf32>
    %22 = vector.multi_reduction <add>, %21, %cst_12 [1] : vector<2x8xf32> to vector<2xf32>
    %23 = vector.shape_cast %22 : vector<2xf32> to vector<2x1xf32>
    %24 = tpu.reciprocal %23 {approx = true} : vector<2x1xf32> -> vector<2x1xf32>
    %25 = arith.mulf %23, %24 : vector<2x1xf32>
    %cst_13 = arith.constant 2.000000e+00 : f32
    %26 = vector.broadcast %cst_13 : f32 to vector<2x1xf32>
    %27 = arith.subf %26, %25 : vector<2x1xf32>
    %28 = arith.mulf %24, %27 : vector<2x1xf32>
    %29 = vector.broadcast %28 : vector<2x1xf32> to vector<2x8xf32>
    %30 = arith.mulf %21, %29 : vector<2x8xf32>
    %c0_14 = arith.constant 0 : index
    %c0_15 = arith.constant 0 : index
    %31 = vector.load %arg5[%c0_14, %c0_15] : memref<2x8xf32, #tpu.memory_space<vmem>>, vector<2x8xf32>
    tpu.vector_store %arg5[%c0_14, %c0_15], %30 {strides = array<i32>} : memref<2x8xf32, #tpu.memory_space<vmem>>, vector<2x8xf32>,
    return
  }
  func.func @transform_0(%arg0: i32) -> (i32, i32, i32) {
    %c0_i32 = arith.constant 0 : i32
    %c0_i32_0 = arith.constant 0 : i32
    %c0_i32_1 = arith.constant 0 : i32
    return %arg0, %c0_i32, %c0_i32_0 : i32, i32, i32
  }
  func.func @transform_1(%arg0: i32) -> (i32, i32) {
    %c0_i32 = arith.constant 0 : i32
    %c0_i32_0 = arith.constant 0 : i32
    %c0_i32_1 = arith.constant 0 : i32
    return %c0_i32, %c0_i32_0 : i32, i32
  }
  func.func @transform_2(%arg0: i32) -> (i32, i32) {
    %c0_i32 = arith.constant 0 : i32
    %c0_i32_0 = arith.constant 0 : i32
    %c0_i32_1 = arith.constant 0 : i32
    return %c0_i32, %c0_i32_0 : i32, i32
  }
  func.func @transform_3(%arg0: i32) -> (i32, i32) {
    %c0_i32 = arith.constant 0 : i32
    %c0_i32_0 = arith.constant 0 : i32
    return %arg0, %c0_i32 : i32, i32
  }
  func.func @transform_4(%arg0: i32) -> (i32, i32) {
    %c0_i32 = arith.constant 0 : i32
    %c0_i32_0 = arith.constant 0 : i32
    return %arg0, %c0_i32 : i32, i32
  }
}

</mosaic_0001>

<bundles_post_ra>
// kernel: tpu_custom_call.1
= control target key start
LH: loop header
LB: loop body
LE: loop exit
PB: predicated region body
PF: predicated region fallthrough
CT: control target
= control target key end

     0   :  { %9 = vsyncpa [#allocation3], 0  ;;  %s450_s0 = inlined_call_operand.hbm [shape: f32[2,8,16], index: 0, kind: input, shape index: {}]   ;;  %s451_s1 = inlined_call_operand.hbm [shape: f32[16,32], index: 1, kind: input, shape index: {}]   ;;  %s452_s2 = inlined_call_operand.vmem [shape: f32[1,32], index: 2, kind: input, shape index: {}]   ;;  %s453_s3 = inlined_call_operand.vmem [shape: f32[2,32], index: 3, kind: input, shape index: {}]   ;;  %s454_s4 = inlined_call_operand.hbm [shape: f32[2,8], index: 4, kind: output, shape index: {}]  }
   0x1   :  { %10 = vsyncpa [#allocation6], 0 }
   0x2   :  { %11 = vsyncpa [#allocation4], 0  ;;  %s391_s15 = smov [#allocation2]  }
   0x3   :  { %s17_s16 = sshll.u32 %s391_s15, 4  ;;  %s18_s16 = int_to_ptr.vmem [resolvable:$true] %s17_s16 }
   0x4   :  { %s333_s17 = scalar_lea.vmem %s18_s16, 256  ;;  %p338_p1 = scmp.lt.s32.totalorder %s18_s16, %s18_s16 }
   0x5   :  { %p334_p0 = scmp.ne.s32.totalorder %s18_s16, %s333_s17  ;;  %p339_p2 = scmp.lt.s32.totalorder %s333_s17, %s333_s17 }
   0x7   :  { %p340_p3 = por %p339_p2, %p338_p1 }
   0x9   :  { %p341_p4 = pnand %p340_p3, %p334_p0 }
   0xb   :  { %344 = shalt.err (!%p341_p4)
}
   0xc   :  { %s392_s18 = smov 128   ;;  %s393_s19 = smov 8  }
   0xd   :  { %23 = dma.hbm_to_vmem [thread:$0]  %s450_s0, 256, %s18_s16, [#allocation3], %s392_s18, %s392_s18, %s393_s19  }
   0xe   :  { %s394_s22 = smov [#allocation5]  }
   0xf   :  { %s29_s23 = sshll.u32 %s394_s22, 4  ;;  %s30_s23 = int_to_ptr.vmem [resolvable:$true] %s29_s23 }
  0x10   :  { %s353_s24 = scalar_lea.vmem %s30_s23, 256  ;;  %p358_p6 = scmp.lt.s32.totalorder %s30_s23, %s30_s23 }
  0x11   :  { %p354_p5 = scmp.ne.s32.totalorder %s30_s23, %s353_s24  ;;  %p359_p7 = scmp.lt.s32.totalorder %s353_s24, %s353_s24 }
  0x13   :  { %p360_p8 = por %p359_p7, %p358_p6 }
  0x15   :  { %p361_p9 = pnand %p360_p8, %p354_p5 }
  0x17   :  { %364 = shalt.err (!%p361_p9)
}
  0x18   :  { %35 = dma.hbm_to_vmem [thread:$0]  %s451_s1, 256, %s30_s23, [#allocation6], %s392_s18, %s392_s18, %s393_s19  }
  0x19   :  { %385 = dma.done.wait [#allocation3], 256  }
  0x1a   :  { %386 = vsyncadd [#allocation3], 4294967040 }
  0x1b   :  { %387 = dma.done.wait [#allocation6], 256  }
  0x1c   :  { %388 = vsyncadd [#allocation6], 4294967040  ;;  %vm57_vm0 = vcmask 130048   ;;  %v49_v0 = vld [vmem:[#allocation5 + $0x8] sm:$0xff]  ;;  %v48_v1 = vld [vmem:[#allocation5] sm:$0xff]  ;;  %v154_v6 = vlaneseq  ;;  %vm177_vm1 = vcmask 261120  }
  0x1d   :  { %v46_v2 = vld [vmem:[#allocation2] sm:$0xff]  ;;  %303 = vmatprep.subr.mxu0 %v49_v0  ;;  %v47_v3 = vld [vmem:[#allocation2 + $0x8] sm:$0xff]  ;;  %v395_v4 = vmov 1966171168   ;;  %vm198_vm2 = vcmask 1041409   ;;  %vm201_vm3 = vcmask 58368  }
  0x1e   :  { %307 = vmatprep.mubr.msk.f32.mxu0 %vm57_vm0, %v46_v2  ;;  %304 = vmatpush3.msra.mxu0 %v49_v0  ;;  %v152_v5 = vunpack.c.l.s4 %v395_v4  ;;  %v429_v8 = vshrl.u32 %v154_v6, 7  ;;  %v298_v9 = vld.sshfl [vmem:[%s453_s3] sm:$0x11 pattern:$0x75316420]  ;;  %v189_v28 = vand.u32 127, %v154_v6 }
  0x1f   :  { %305 = vmatprep.subr.mxu0 %v48_v1  ;;  %v150_v10 = vcombine.high %v298_v9, %v298_v9  ;;  %v295_v12 = vld [vmem:[%s452_s2] ss:$0 sm:$0xff]  ;;  %v396_v36 = vmov 0   ;;  %s397_s2 = smov [#allocation7]  }
  0x20   :  { %306 = vmatpush3.msra.mxu0 %v48_v1  ;;  %v153_v7 = vunpack.c.0.s8 %v152_v5  ;;  %v167_v16 = vsub.s32 0, %v429_v8  ;;  %v192_v30 = vsub.s32 %v189_v28, %v429_v8  ;;  %318 = vset.pattern.permute.xlu0 %v396_v36  ;;  %v212_v37 = vsub.s32 1, %v429_v8  ;;  %s285_s3 = sshll.u32 %s397_s2, 4  ;;  %s286_s3 = int_to_ptr.vmem [resolvable:$true] %s285_s3 }
  0x21   :  { %308 = vmatmul.mubr.msk.f32.vlgmr.msra.gmra.mxu0 %vm57_vm0, %v47_v3  ;;  %317 = vset.pattern.permute.xlu1 %v396_v36  ;;  %s365_s29 = scalar_lea.vmem %s286_s3, 32  ;;  %p370_p11 = scmp.lt.s32.totalorder %s286_s3, %s286_s3 }
  0x22   :  { %v156_v11 = vsub.s32 %v153_v7, %v429_v8  ;;  %p366_p10 = scmp.ne.s32.totalorder %s286_s3, %s365_s29  ;;  %p371_p12 = scmp.lt.s32.totalorder %s365_s29, %s365_s29 }
  0x24   :  { %v157_v13 = vrot.slane %v298_v9, %v156_v11  ;;  %v164_v17 = vrot.slane %v150_v10, %v156_v11  ;;  %p372_p13 = por %p371_p12, %p370_p11 }
  0x26   :  { %v168_v20 = vrot.slane %v157_v13, %v167_v16  ;;  %v172_v23 = vrot.slane %v164_v17, %v167_v16  ;;  %p373_p0 = pnand %p372_p13, %p366_p10 }
  0xe1   :  { %v309_v14 = vpop.f32.mrf.mxu0 }
  0xe2   :  { %v136_v15 = vadd.f32 %v309_v14, %v295_v12 }
  0xe3   :  { %v130_v18 = vpop.f32.mrf.mxu0 }
  0xe4   :  { %v131_v19 = vadd.f32 %v295_v12, %v130_v18  ;;  %v140_v21 = vmax.f32 %v136_v15, 0.0 }
  0xe6   :  { %v139_v22 = vmax.f32 %v131_v19, 0.0  ;;  %v176_v26 = vmul.f32 %v172_v23, %v140_v21 }
  0xe8   :  { %v175_v24 = vmul.f32 %v168_v20, %v139_v22  ;;  %v181_v27 = vsel %vm177_vm1, %v176_v26, 0.0 }
  0xea   :  { %v178_v25 = vsel %vm177_vm1, %v175_v24, 0.0 }
  0xeb   :  { %179 = vadd.xlane.f32.xlu0 %v178_v25 }
  0xef   :  { %182 = vadd.xlane.f32.xlu0 %v181_v27 }
 0x174   :  { %v180_v29 = vpop.xlane.xlu0 %179 }
 0x175   :  { %v193_v32 = vrot.slane %v180_v29, %v192_v30 }
 0x178   :  { %v183_v31 = vpop.xlane.xlu0 %182 }
 0x179   :  { %v197_v33 = vrot.slane %v183_v31, %v192_v30 }
 0x17b   :  { %v199_v34 = vsel %vm198_vm2, %v197_v33, %v193_v32 }
 0x17c   :  { %v202_v35 = vsel %vm201_vm3, %v199_v34, -inf }
 0x17d   :  { %203 = vmax.xlane.f32.xlu1 %v202_v35 }
 0x206   :  { %v204_v38 = vpop.xlane.xlu1 %203 }
 0x207   :  { %v209_v39 = vrot.slane %v204_v38, %v167_v16  ;;  %v213_v40 = vrot.slane %v204_v38, %v212_v37 }
 0x209   :  { %v216_v41 = vsub.f32 %v180_v29, %v209_v39  ;;  %v217_v42 = vsub.f32 %v183_v31, %v213_v40 }
 0x20b   :  { %v218_v43 = vmul.f32 1.442695, %v216_v41  ;;  %v220_v44 = vmul.f32 1.442695, %v217_v42 }
 0x20d   :  { %319 = vpow2.f32 %v218_v43 }
 0x20e   :  { %321 = vpow2.f32 %v220_v44 }
 0x21a   :  { %v320_v45 = vpop.eup %319 }
 0x21b   :  { %v322_v46 = vpop.eup %321  ;;  %225 = vperm.xlu1 %317, %v320_v45  }
 0x21c   :  { %228 = vperm.xlu0 %318, %v322_v46  }
 0x296   :  { %v226_v47 = vpop.permute.xlu1 %225 }
 0x297   :  { %v229_v48 = vpop.permute.xlu0 %228  ;;  %v233_v49 = vrot.slane %v226_v47, %v192_v30 }
 0x298   :  { %v237_v50 = vrot.slane %v229_v48, %v192_v30 }
 0x29a   :  { %v238_v51 = vsel %vm198_vm2, %v237_v50, %v233_v49 }
 0x29b   :  { %v240_v52 = vsel %vm201_vm3, %v238_v51, 0.0 }
 0x29c   :  { %241 = vadd.xlane.f32.xlu1 %v240_v52 }
 0x325   :  { %v242_v53 = vpop.xlane.xlu1 %241 }
 0x326   :  { %323 = vrcp.f32 %v242_v53 }
 0x333   :  { %v324_v54 = vpop.eup %323 }
 0x334   :  { %v244_v55 = vmul.f32 %v324_v54, %v242_v53 }
 0x336   :  { %v245_v56 = vsub.f32 2.0, %v244_v55 }
 0x338   :  { %v246_v57 = vmul.f32 %v324_v54, %v245_v56 }
 0x33a   :  { %v251_v58 = vrot.slane %v246_v57, %v167_v16  ;;  %v255_v59 = vrot.slane %v246_v57, %v212_v37 }
 0x33c   :  { %v258_v60 = vmul.f32 %v320_v45, %v251_v58  ;;  %v259_v61 = vmul.f32 %v322_v46, %v255_v59 }
 0x33e   :  { %263 = vperm.xlu0 %318, %v258_v60  }
 0x342   :  { %266 = vperm.xlu0 %318, %v259_v61  }
 0x3b9   :  { %v264_v62 = vpop.permute.xlu0 %263 }
 0x3ba   :  { %v271_v0 = vrot.slane %v264_v62, %v192_v30 }
 0x3bd   :  { %v267_v63 = vpop.permute.xlu0 %266 }
 0x3be   :  { %v275_v1 = vrot.slane %v267_v63, %v192_v30 }
 0x3c0   :  { %v276_v2 = vsel %vm198_vm2, %v275_v1, %v271_v0 }
 0x3c1   :  { %278 = vst.msk [vmem:[#allocation7] sm:$0x3] %vm201_vm3, %v276_v2 }
 0x3c2   :  { %376 = shalt.err (!%p373_p0)
}
 0x3c3   :  { %288 = dma.vmem_to_hbm [thread:$0]  %s286_s3, 32, %s454_s4, [#allocation4]  }
 0x3c4   :  { %389 = dma.done.wait [#allocation4], 32  }
 0x3c5   :  { %390 = vsyncadd [#allocation4], 4294967264 }
 0x3c6   :  { %292 = vsyncpa [#allocation3], 1 }
 0x3c7   :  { %293 = vsyncpa [#allocation6], 1 }
 0x3c8   :  { %294 = vsyncpa [#allocation4], 1 }

// kernel: tpu_custom_call.1
= control target key start
LH: loop header
LB: loop body
LE: loop exit
PB: predicated region body
PF: predicated region fallthrough
CT: control target
= control target key end

     0   :  { %9 = vsyncpa [#allocation3], 0  ;;  %s450_s0 = inlined_call_operand.hbm [shape: f32[2,8,16], index: 0, kind: input, shape index: {}]   ;;  %s451_s1 = inlined_call_operand.hbm [shape: f32[16,32], index: 1, kind: input, shape index: {}]   ;;  %s452_s2 = inlined_call_operand.vmem [shape: f32[1,32], index: 2, kind: input, shape index: {}]   ;;  %s453_s3 = inlined_call_operand.vmem [shape: f32[2,32], index: 3, kind: input, shape index: {}]   ;;  %s454_s4 = inlined_call_operand.hbm [shape: f32[2,8], index: 4, kind: output, shape index: {}]  }
   0x1   :  { %10 = vsyncpa [#allocation6], 0 }
   0x2   :  { %11 = vsyncpa [#allocation4], 0  ;;  %s391_s15 = smov [#allocation2]  }
   0x3   :  { %s17_s16 = sshll.u32 %s391_s15, 4  ;;  %s18_s16 = int_to_ptr.vmem [resolvable:$true] %s17_s16 }
   0x4   :  { %s333_s17 = scalar_lea.vmem %s18_s16, 256  ;;  %p338_p1 = scmp.lt.s32.totalorder %s18_s16, %s18_s16 }
   0x5   :  { %p334_p0 = scmp.ne.s32.totalorder %s18_s16, %s333_s17  ;;  %p339_p2 = scmp.lt.s32.totalorder %s333_s17, %s333_s17 }
   0x7   :  { %p340_p3 = por %p339_p2, %p338_p1 }
   0x9   :  { %p341_p4 = pnand %p340_p3, %p334_p0 }
   0xb   :  { %344 = shalt.err (!%p341_p4)
}
   0xc   :  { %s392_s18 = smov 128   ;;  %s393_s19 = smov 8  }
   0xd   :  { %23 = dma.hbm_to_vmem [thread:$0]  %s450_s0, 256, %s18_s16, [#allocation3], %s392_s18, %s392_s18, %s393_s19  }
   0xe   :  { %s394_s22 = smov [#allocation5]  }
   0xf   :  { %s29_s23 = sshll.u32 %s394_s22, 4  ;;  %s30_s23 = int_to_ptr.vmem [resolvable:$true] %s29_s23 }
  0x10   :  { %s353_s24 = scalar_lea.vmem %s30_s23, 256  ;;  %p358_p6 = scmp.lt.s32.totalorder %s30_s23, %s30_s23 }
  0x11   :  { %p354_p5 = scmp.ne.s32.totalorder %s30_s23, %s353_s24  ;;  %p359_p7 = scmp.lt.s32.totalorder %s353_s24, %s353_s24 }
  0x13   :  { %p360_p8 = por %p359_p7, %p358_p6 }
  0x15   :  { %p361_p9 = pnand %p360_p8, %p354_p5 }
  0x17   :  { %364 = shalt.err (!%p361_p9)
}
  0x18   :  { %35 = dma.hbm_to_vmem [thread:$0]  %s451_s1, 256, %s30_s23, [#allocation6], %s392_s18, %s392_s18, %s393_s19  }
  0x19   :  { %385 = dma.done.wait [#allocation3], 256  }
  0x1a   :  { %386 = vsyncadd [#allocation3], 4294967040 }
  0x1b   :  { %387 = dma.done.wait [#allocation6], 256  }
  0x1c   :  { %388 = vsyncadd [#allocation6], 4294967040  ;;  %vm57_vm0 = vcmask 130048   ;;  %v49_v0 = vld [vmem:[#allocation5 + $0x8] sm:$0xff]  ;;  %v48_v1 = vld [vmem:[#allocation5] sm:$0xff]  ;;  %v154_v6 = vlaneseq  ;;  %vm177_vm1 = vcmask 261120  }
  0x1d   :  { %v46_v2 = vld [vmem:[#allocation2] sm:$0xff]  ;;  %303 = vmatprep.subr.mxu0 %v49_v0  ;;  %v47_v3 = vld [vmem:[#allocation2 + $0x8] sm:$0xff]  ;;  %v395_v4 = vmov 1966171168   ;;  %vm198_vm2 = vcmask 1041409   ;;  %vm201_vm3 = vcmask 58368  }
  0x1e   :  { %307 = vmatprep.mubr.msk.f32.mxu0 %vm57_vm0, %v46_v2  ;;  %304 = vmatpush3.msra.mxu0 %v49_v0  ;;  %v152_v5 = vunpack.c.l.s4 %v395_v4  ;;  %v429_v8 = vshrl.u32 %v154_v6, 7  ;;  %v298_v9 = vld.sshfl [vmem:[%s453_s3] sm:$0x11 pattern:$0x75316420]  ;;  %v189_v28 = vand.u32 127, %v154_v6 }
  0x1f   :  { %305 = vmatprep.subr.mxu0 %v48_v1  ;;  %v150_v10 = vcombine.high %v298_v9, %v298_v9  ;;  %v295_v12 = vld [vmem:[%s452_s2] ss:$0 sm:$0xff]  ;;  %v396_v36 = vmov 0   ;;  %s397_s2 = smov [#allocation7]  }
  0x20   :  { %306 = vmatpush3.msra.mxu0 %v48_v1  ;;  %v153_v7 = vunpack.c.0.s8 %v152_v5  ;;  %v167_v16 = vsub.s32 0, %v429_v8  ;;  %v192_v30 = vsub.s32 %v189_v28, %v429_v8  ;;  %318 = vset.pattern.permute.xlu0 %v396_v36  ;;  %v212_v37 = vsub.s32 1, %v429_v8  ;;  %s285_s3 = sshll.u32 %s397_s2, 4  ;;  %s286_s3 = int_to_ptr.vmem [resolvable:$true] %s285_s3 }
  0x21   :  { %308 = vmatmul.mubr.msk.f32.vlgmr.msra.gmra.mxu0 %vm57_vm0, %v47_v3  ;;  %317 = vset.pattern.permute.xlu1 %v396_v36  ;;  %s365_s29 = scalar_lea.vmem %s286_s3, 32  ;;  %p370_p11 = scmp.lt.s32.totalorder %s286_s3, %s286_s3 }
  0x22   :  { %v156_v11 = vsub.s32 %v153_v7, %v429_v8  ;;  %p366_p10 = scmp.ne.s32.totalorder %s286_s3, %s365_s29  ;;  %p371_p12 = scmp.lt.s32.totalorder %s365_s29, %s365_s29 }
  0x24   :  { %v157_v13 = vrot.slane %v298_v9, %v156_v11  ;;  %v164_v17 = vrot.slane %v150_v10, %v156_v11  ;;  %p372_p13 = por %p371_p12, %p370_p11 }
  0x26   :  { %v168_v20 = vrot.slane %v157_v13, %v167_v16  ;;  %v172_v23 = vrot.slane %v164_v17, %v167_v16  ;;  %p373_p0 = pnand %p372_p13, %p366_p10 }
  0xe1   :  { %v309_v14 = vpop.f32.mrf.mxu0 }
  0xe2   :  { %v136_v15 = vadd.f32 %v309_v14, %v295_v12 }
  0xe3   :  { %v130_v18 = vpop.f32.mrf.mxu0 }
  0xe4   :  { %v131_v19 = vadd.f32 %v295_v12, %v130_v18  ;;  %v140_v21 = vmax.f32 %v136_v15, 0.0 }
  0xe6   :  { %v139_v22 = vmax.f32 %v131_v19, 0.0  ;;  %v176_v26 = vmul.f32 %v172_v23, %v140_v21 }
  0xe8   :  { %v175_v24 = vmul.f32 %v168_v20, %v139_v22  ;;  %v181_v27 = vsel %vm177_vm1, %v176_v26, 0.0 }
  0xea   :  { %v178_v25 = vsel %vm177_vm1, %v175_v24, 0.0 }
  0xeb   :  { %179 = vadd.xlane.f32.xlu0 %v178_v25 }
  0xef   :  { %182 = vadd.xlane.f32.xlu0 %v181_v27 }
 0x174   :  { %v180_v29 = vpop.xlane.xlu0 %179 }
 0x175   :  { %v193_v32 = vrot.slane %v180_v29, %v192_v30 }
 0x178   :  { %v183_v31 = vpop.xlane.xlu0 %182 }
 0x179   :  { %v197_v33 = vrot.slane %v183_v31, %v192_v30 }
 0x17b   :  { %v199_v34 = vsel %vm198_vm2, %v197_v33, %v193_v32 }
 0x17c   :  { %v202_v35 = vsel %vm201_vm3, %v199_v34, -inf }
 0x17d   :  { %203 = vmax.xlane.f32.xlu1 %v202_v35 }
 0x206   :  { %v204_v38 = vpop.xlane.xlu1 %203 }
 0x207   :  { %v209_v39 = vrot.slane %v204_v38, %v167_v16  ;;  %v213_v40 = vrot.slane %v204_v38, %v212_v37 }
 0x209   :  { %v216_v41 = vsub.f32 %v180_v29, %v209_v39  ;;  %v217_v42 = vsub.f32 %v183_v31, %v213_v40 }
 0x20b   :  { %v218_v43 = vmul.f32 1.442695, %v216_v41  ;;  %v220_v44 = vmul.f32 1.442695, %v217_v42 }
 0x20d   :  { %319 = vpow2.f32 %v218_v43 }
 0x20e   :  { %321 = vpow2.f32 %v220_v44 }
 0x21a   :  { %v320_v45 = vpop.eup %319 }
 0x21b   :  { %v322_v46 = vpop.eup %321  ;;  %225 = vperm.xlu1 %317, %v320_v45  }
 0x21c   :  { %228 = vperm.xlu0 %318, %v322_v46  }
 0x296   :  { %v226_v47 = vpop.permute.xlu1 %225 }
 0x297   :  { %v229_v48 = vpop.permute.xlu0 %228  ;;  %v233_v49 = vrot.slane %v226_v47, %v192_v30 }
 0x298   :  { %v237_v50 = vrot.slane %v229_v48, %v192_v30 }
 0x29a   :  { %v238_v51 = vsel %vm198_vm2, %v237_v50, %v233_v49 }
 0x29b   :  { %v240_v52 = vsel %vm201_vm3, %v238_v51, 0.0 }
 0x29c   :  { %241 = vadd.xlane.f32.xlu1 %v240_v52 }
 0x325   :  { %v242_v53 = vpop.xlane.xlu1 %241 }
 0x326   :  { %323 = vrcp.f32 %v242_v53 }
 0x333   :  { %v324_v54 = vpop.eup %323 }
 0x334   :  { %v244_v55 = vmul.f32 %v324_v54, %v242_v53 }
 0x336   :  { %v245_v56 = vsub.f32 2.0, %v244_v55 }
 0x338   :  { %v246_v57 = vmul.f32 %v324_v54, %v245_v56 }
 0x33a   :  { %v251_v58 = vrot.slane %v246_v57, %v167_v16  ;;  %v255_v59 = vrot.slane %v246_v57, %v212_v37 }
 0x33c   :  { %v258_v60 = vmul.f32 %v320_v45, %v251_v58  ;;  %v259_v61 = vmul.f32 %v322_v46, %v255_v59 }
 0x33e   :  { %263 = vperm.xlu0 %318, %v258_v60  }
 0x342   :  { %266 = vperm.xlu0 %318, %v259_v61  }
 0x3b9   :  { %v264_v62 = vpop.permute.xlu0 %263 }
 0x3ba   :  { %v271_v0 = vrot.slane %v264_v62, %v192_v30 }
 0x3bd   :  { %v267_v63 = vpop.permute.xlu0 %266 }
 0x3be   :  { %v275_v1 = vrot.slane %v267_v63, %v192_v30 }
 0x3c0   :  { %v276_v2 = vsel %vm198_vm2, %v275_v1, %v271_v0 }
 0x3c1   :  { %278 = vst.msk [vmem:[#allocation7] sm:$0x3] %vm201_vm3, %v276_v2 }
 0x3c2   :  { %376 = shalt.err (!%p373_p0)
}
 0x3c3   :  { %288 = dma.vmem_to_hbm [thread:$0]  %s286_s3, 32, %s454_s4, [#allocation4]  }
 0x3c4   :  { %389 = dma.done.wait [#allocation4], 32  }
 0x3c5   :  { %390 = vsyncadd [#allocation4], 4294967264 }
 0x3c6   :  { %292 = vsyncpa [#allocation3], 1 }
 0x3c7   :  { %293 = vsyncpa [#allocation6], 1 }
 0x3c8   :  { %294 = vsyncpa [#allocation4], 1 }

</bundles_post_ra>
